<compile_context>
chip_gen: v6e
topology: v6e:2x2x1
jax: 0.10.0
libtpu: 0.0.40
codegen_flags: <defaults>
</compile_context>

<pallas_src>
import functools

import jax
import jax.numpy as jnp
from jax.experimental import pallas as pl
from jax.experimental.pallas import tpu as pltpu

LANES = 128
BLOCK_BYTES = 8 * 1024 * 1024        # HBM bytes per input per grid step
CHUNK_ROWS = 1024                    # in-kernel accumulation chunk (512 KiB f32)
VMEM_LIMIT_BYTES = 48 * 1024 * 1024  # 32 MiB double-buffered inputs + temps


def _abs_diff_partial(t, p):
    """(r, 128) chunk pair -> (8, 128) f32 partial |t - p| sum.

    Reshaping (r,128)->(r//8,8,128) matches the native (8,128) vreg tiling, so
    the axis-0 sum is vreg-wise VPU adds only (no per-chunk cross-lane XLU work).
    """
    a = jnp.abs(t.astype(jnp.float32) - p.astype(jnp.float32))
    return jnp.sum(a.reshape(a.shape[0] // 8, 8, LANES), axis=0)


def _l1_partial_kernel(t_ref, p_ref, o_ref, *, row_tile, chunk):
    """One (row_tile, 128) block -> one (8, 128) partial sum (chunked)."""
    n_chunks = row_tile // chunk
    rem_rows = row_tile % chunk        # static; multiple of 8

    acc = jnp.zeros((8, LANES), jnp.float32)

    if n_chunks > 0:
        def body(c, acc):
            r0 = pl.multiple_of(c * chunk, chunk)
            return acc + _abs_diff_partial(t_ref[pl.ds(r0, chunk), :],
                                           p_ref[pl.ds(r0, chunk), :])
        acc = jax.lax.fori_loop(0, n_chunks, body, acc)

    if rem_rows:  # static remainder chunk
        r0 = n_chunks * chunk
        acc = acc + _abs_diff_partial(t_ref[pl.ds(r0, rem_rows), :],
                                      p_ref[pl.ds(r0, rem_rows), :])

    o_ref[...] = acc.reshape(1, 8, LANES)


def reconstruction_loss(target_sdf, predicted_sdf):
    """Mean absolute error, identical semantics to torch.nn.L1Loss('mean')."""
    assert target_sdf.shape == predicted_sdf.shape
    n_elems = target_sdf.size
    if n_elems == 0:
        return jnp.float32(jnp.nan)  # matches torch L1Loss on empty input

    t_flat = target_sdf.reshape(-1)
    p_flat = predicted_sdf.reshape(-1)

    itemsize = jnp.dtype(target_sdf.dtype).itemsize
    # Sublane packing multiple: 8 for 32-bit, 16 for bf16/f16, 32 for 8-bit.
    sub_mult = 8 * max(1, 4 // itemsize)

    rows = n_elems // LANES              # full 128-lane rows
    lane_tail = n_elems - rows * LANES   # < 128 trailing elements

    # Row tile from a byte budget (not a fixed row count), rounded to sub_mult.
    budget_rows = max(
        sub_mult, (BLOCK_BYTES // (itemsize * LANES)) // sub_mult * sub_mult)
    if rows >= sub_mult:
        row_tile = min(budget_rows, rows // sub_mult * sub_mult)
        n_tiles = rows // row_tile
    else:
        row_tile, n_tiles = 0, 0

    covered_rows = n_tiles * row_tile
    covered = covered_rows * LANES       # elements handled by the Pallas kernel

    total = jnp.zeros((), jnp.float32)

    if n_tiles > 0:
        if lane_tail == 0:
            # Free reshape of the contiguous flat array -- zero extra copies.
            t2 = t_flat.reshape(rows, LANES)
            p2 = p_flat.reshape(rows, LANES)
        else:
            # Rare unaligned case: slice off the lane-aligned prefix only.
            t2 = jax.lax.slice(t_flat, (0,), (rows * LANES,)).reshape(rows, LANES)
            p2 = jax.lax.slice(p_flat, (0,), (rows * LANES,)).reshape(rows, LANES)

        chunk = min(CHUNK_ROWS, row_tile)
        kernel = functools.partial(_l1_partial_kernel,
                                   row_tile=row_tile, chunk=chunk)

        cost = pl.CostEstimate(
            flops=3 * covered,  # sub + abs + reduce-add per element
            transcendentals=0,
            bytes_accessed=2 * covered * itemsize + n_tiles * 8 * LANES * 4,
        )

        partials = pl.pallas_call(
            kernel,
            out_shape=jax.ShapeDtypeStruct((n_tiles, 8, LANES), jnp.float32),
            grid_spec=pltpu.PrefetchScalarGridSpec(
                num_scalar_prefetch=0,
                grid=(n_tiles,),
                in_specs=[
                    pl.BlockSpec((row_tile, LANES), lambda i: (i, 0)),
                    pl.BlockSpec((row_tile, LANES), lambda i: (i, 0)),
                ],
                out_specs=pl.BlockSpec((1, 8, LANES), lambda i: (i, 0, 0)),
            ),
            compiler_params=pltpu.CompilerParams(
                # Independent tiles: megacore shards this axis on v7x;
                # harmless on single-TC v5e/v6e.
                dimension_semantics=("parallel",),
                vmem_limit_bytes=VMEM_LIMIT_BYTES,
            ),
            cost_estimate=cost,
        )(t2, p2)

        total = total + jnp.sum(partials)

    if covered < n_elems:
        # Ragged tail (rows beyond the last full tile + any <128-lane tail):
        # tiny plain-XLA reduce instead of in-kernel masking on every tile.
        t_rest = t_flat[covered:].astype(jnp.float32)
        p_rest = p_flat[covered:].astype(jnp.float32)
        total = total + jnp.sum(jnp.abs(t_rest - p_rest))

    return (total / jnp.float32(n_elems)).astype(jnp.float32)


if __name__ == "__main__":
    key = jax.random.PRNGKey(0)
    k1, k2 = jax.random.split(key)
    # SDF volumes, NCHW-style: batch=2, channels=4, spatial 16x16.
    target_sdf = jax.random.normal(k1, (2, 4, 16, 16), dtype=jnp.float32)
    predicted_sdf = jax.random.normal(k2, (2, 4, 16, 16), dtype=jnp.float32)

    loss = reconstruction_loss(target_sdf, predicted_sdf)
    jax.block_until_ready(loss)

    ref = jnp.mean(jnp.abs(target_sdf - predicted_sdf))
    assert jnp.allclose(loss, ref, rtol=1e-5, atol=1e-6), (loss, ref)

    # Also exercise the ragged-tail path (total size not a multiple of 128).
    k3, k4 = jax.random.split(k2)
    t_odd = jax.random.normal(k3, (3, 5, 7, 11), dtype=jnp.float32)
    p_odd = jax.random.normal(k4, (3, 5, 7, 11), dtype=jnp.float32)
    loss_odd = reconstruction_loss(t_odd, p_odd)
    jax.block_until_ready(loss_odd)
    ref_odd = jnp.mean(jnp.abs(t_odd - p_odd))
    assert jnp.allclose(loss_odd, ref_odd, rtol=1e-5, atol=1e-6), (loss_odd, ref_odd)

    print("KERNEL_OK")
</pallas_src>

<mosaic_0001>
module attributes {stable_mosaic.version = 11 : i64} {
  func.func @_l1_partial_kernel(%arg0: i32, %arg1: memref<16x128xf32, #tpu.memory_space<vmem>>, %arg2: memref<16x128xf32, #tpu.memory_space<vmem>>, %arg3: memref<1x8x128xf32, #tpu.memory_space<vmem>>) attributes {dimension_semantics = [#tpu.dimension_semantics<parallel>], iteration_bounds = array<i64: 1>, scalar_prefetch = 0 : i64, scratch_operands = 0 : i64, tpu.core_type = #tpu.core_type<tc>, window_params = [{transform_indices = @transform_0, window_bounds = array<i64: 16, 128>}, {transform_indices = @transform_1, window_bounds = array<i64: 16, 128>}, {transform_indices = @transform_2, window_bounds = array<i64: 1, 8, 128>}]} {
    %cst = arith.constant 0.000000e+00 : f32
    %0 = vector.broadcast %cst : f32 to vector<8x128xf32>
    %c0_i32 = arith.constant 0 : i32
    %c16_i32 = arith.constant 16 : i32
    %1 = arith.muli %c0_i32, %c16_i32 : i32
    %2 = tpu.assume_multiple %1, 16 : i32
    %3 = arith.index_cast %2 : i32 to index
    %c0 = arith.constant 0 : index
    %4 = vector.load %arg1[%3, %c0] : memref<16x128xf32, #tpu.memory_space<vmem>>, vector<16x128xf32>
    %5 = arith.index_cast %2 : i32 to index
    %c0_0 = arith.constant 0 : index
    %6 = vector.load %arg2[%5, %c0_0] : memref<16x128xf32, #tpu.memory_space<vmem>>, vector<16x128xf32>
    %7 = arith.subf %4, %6 : vector<16x128xf32>
    %8 = math.absf %7 : vector<16x128xf32>
    %9 = vector.shape_cast %8 : vector<16x128xf32> to vector<2x8x128xf32>
    %cst_1 = arith.constant dense<0.000000e+00> : vector<8x128xf32>
    %10 = vector.multi_reduction <add>, %9, %cst_1 [0] : vector<2x8x128xf32> to vector<8x128xf32>
    %11 = arith.addf %0, %10 : vector<8x128xf32>
    %c1_i32 = arith.constant 1 : i32
    %12 = vector.shape_cast %11 : vector<8x128xf32> to vector<1x8x128xf32>
    %c0_2 = arith.constant 0 : index
    %c0_3 = arith.constant 0 : index
    %c0_4 = arith.constant 0 : index
    %13 = vector.load %arg3[%c0_2, %c0_3, %c0_4] : memref<1x8x128xf32, #tpu.memory_space<vmem>>, vector<1x8x128xf32>
    tpu.vector_store %arg3[%c0_2, %c0_3, %c0_4], %12 {strides = array<i32>} : memref<1x8x128xf32, #tpu.memory_space<vmem>>, vector<1x8x128xf32>,
    return
  }
  func.func @transform_0(%arg0: i32) -> (i32, i32) {
    %c0_i32 = arith.constant 0 : i32
    %c0_i32_0 = arith.constant 0 : i32
    return %arg0, %c0_i32 : i32, i32
  }
  func.func @transform_1(%arg0: i32) -> (i32, i32) {
    %c0_i32 = arith.constant 0 : i32
    %c0_i32_0 = arith.constant 0 : i32
    return %arg0, %c0_i32 : i32, i32
  }
  func.func @transform_2(%arg0: i32) -> (i32, i32, i32) {
    %c0_i32 = arith.constant 0 : i32
    %c0_i32_0 = arith.constant 0 : i32
    %c0_i32_1 = arith.constant 0 : i32
    return %arg0, %c0_i32, %c0_i32_0 : i32, i32, i32
  }
}

</mosaic_0001>

<bundles_post_ra>
// kernel: tpu_custom_call.1
= control target key start
LH: loop header
LB: loop body
LE: loop exit
PB: predicated region body
PF: predicated region fallthrough
CT: control target
= control target key end

     0   :  { %7 = vsyncpa [#allocation3], 0  ;;  %s167_s0 = inlined_call_operand.hbm [shape: f32[16,128], index: 0, kind: input, shape index: {}]   ;;  %s168_s1 = inlined_call_operand.hbm [shape: f32[16,128], index: 1, kind: input, shape index: {}]   ;;  %s169_s2 = inlined_call_operand.hbm [shape: f32[1,8,128], index: 2, kind: output, shape index: {}]  }
   0x1   :  { %8 = vsyncpa [#allocation6], 0 }
   0x2   :  { %9 = vsyncpa [#allocation4], 0  ;;  %s138_s9 = smov [#allocation2]  }
   0x3   :  { %s15_s10 = sshll.u32 %s138_s9, 4  ;;  %s16_s10 = int_to_ptr.vmem [resolvable:$true] %s15_s10 }
   0x4   :  { %s80_s11 = scalar_lea.vmem %s16_s10, 256  ;;  %p85_p1 = scmp.lt.s32.totalorder %s16_s10, %s16_s10 }
   0x5   :  { %p81_p0 = scmp.ne.s32.totalorder %s16_s10, %s80_s11  ;;  %p86_p2 = scmp.lt.s32.totalorder %s80_s11, %s80_s11 }
   0x7   :  { %p87_p3 = por %p86_p2, %p85_p1 }
   0x9   :  { %p88_p4 = pnand %p87_p3, %p81_p0 }
   0xb   :  { %91 = shalt.err (!%p88_p4)
}
   0xc   :  { %s139_s12 = smov 128   ;;  %s140_s13 = smov 8  }
   0xd   :  { %21 = dma.hbm_to_vmem [thread:$0]  %s167_s0, 256, %s16_s10, [#allocation3], %s139_s12, %s139_s12, %s140_s13  }
   0xe   :  { %s141_s16 = smov [#allocation5]  }
   0xf   :  { %s27_s17 = sshll.u32 %s141_s16, 4  ;;  %s28_s17 = int_to_ptr.vmem [resolvable:$true] %s27_s17 }
  0x10   :  { %s100_s18 = scalar_lea.vmem %s28_s17, 256  ;;  %p105_p6 = scmp.lt.s32.totalorder %s28_s17, %s28_s17 }
  0x11   :  { %p101_p5 = scmp.ne.s32.totalorder %s28_s17, %s100_s18  ;;  %p106_p7 = scmp.lt.s32.totalorder %s100_s18, %s100_s18 }
  0x13   :  { %p107_p8 = por %p106_p7, %p105_p6 }
  0x15   :  { %p108_p9 = pnand %p107_p8, %p101_p5 }
  0x17   :  { %111 = shalt.err (!%p108_p9)
}
  0x18   :  { %33 = dma.hbm_to_vmem [thread:$0]  %s168_s1, 256, %s28_s17, [#allocation6], %s139_s12, %s139_s12, %s140_s13  }
  0x19   :  { %132 = dma.done.wait [#allocation3], 256  }
  0x1a   :  { %133 = vsyncadd [#allocation3], 4294967040 }
  0x1b   :  { %134 = dma.done.wait [#allocation6], 256  }
  0x1c   :  { %135 = vsyncadd [#allocation6], 4294967040  ;;  %v40_v0 = vld [vmem:[#allocation2] sm:$0xff]  ;;  %v41_v1 = vld [vmem:[#allocation2 + $0x8] sm:$0xff]  ;;  %s142_s0 = smov [#allocation7]  }
  0x1d   :  { %v42_v2 = vld [vmem:[#allocation5] sm:$0xff]  ;;  %v43_v3 = vld [vmem:[#allocation5 + $0x8] sm:$0xff]  ;;  %s57_s21 = sshll.u32 %s142_s0, 4  ;;  %s58_s21 = int_to_ptr.vmem [resolvable:$true] %s57_s21 }
  0x1e   :  { %v44_v4 = vsub.f32 %v40_v0, %v42_v2  ;;  %v45_v5 = vsub.f32 %v41_v1, %v43_v3  ;;  %s112_s22 = scalar_lea.vmem %s58_s21, 128  ;;  %p117_p11 = scmp.lt.s32.totalorder %s58_s21, %s58_s21 }
  0x1f   :  { %p113_p10 = scmp.ne.s32.totalorder %s58_s21, %s112_s22  ;;  %p118_p12 = scmp.lt.s32.totalorder %s112_s22, %s112_s22 }
  0x20   :  { %v46_v6 = vand.u32 2147483647, %v44_v4  ;;  %v47_v7 = vand.u32 2147483647, %v45_v5 }
  0x21   :  { %p119_p13 = por %p118_p12, %p117_p11 }
  0x22   :  { %v48_v8 = vadd.f32 %v47_v7, %v46_v6 }
  0x23   :  { %p120_p0 = pnand %p119_p13, %p113_p10 }
  0x24   :  { %50 = vst [vmem:[#allocation7] sm:$0xff] %v48_v8 }
  0x25   :  { %123 = shalt.err (!%p120_p0)
}
  0x26   :  { %60 = dma.vmem_to_hbm [thread:$0]  %s58_s21, 128, %s169_s2, [#allocation4]  }
  0x27   :  { %136 = dma.done.wait [#allocation4], 128  }
  0x28   :  { %137 = vsyncadd [#allocation4], 4294967168 }
  0x29   :  { %64 = vsyncpa [#allocation3], 1 }
  0x2a   :  { %65 = vsyncpa [#allocation6], 1 }
  0x2b   :  { %66 = vsyncpa [#allocation4], 1 }

</bundles_post_ra>
